<compile_context>
chip_gen: v7x
topology: tpu7x:2x2x1
jax: 0.10.0
libtpu: 0.0.40
codegen_flags: <defaults>
</compile_context>

<pallas_src>
import functools

import jax
import jax.numpy as jnp
from jax.experimental import pallas as pl
from jax.experimental.pallas import tpu as pltpu


def _textcnn_kernel(S, emb_ref, wconv_ref, bconv_ref, lvalid_ref,
                    wfc_ref, bfc_ref, out_ref, acc_ref):
    """Fused merged-branch conv + bias + ReLU + mask + max-pool + fc.

    emb_ref   : (TB*S, E)   bf16  streamed embedding tile (TB batch rows)
    wconv_ref : (kmax*E, 3C) bf16 merged conv weights (zero rows for short k)
    bconv_ref : (1, 3C)     f32   merged conv biases
    lvalid_ref: (1, 3C)     int32 #valid window positions per channel
    wfc_ref   : (3C, 128)   f32   fc weight, zero-padded to 128 output lanes
    bfc_ref   : (1, 128)    f32   fc bias, zero-padded
    out_ref   : (TB, 128)   f32   lane-dense logits tile
    acc_ref   : (TB*S, 3C)  f32   VMEM scratch conv accumulator
    """
    TBS, E = emb_ref.shape
    C3 = wconv_ref.shape[1]
    kmax = wconv_ref.shape[0] // E
    TB = TBS // S

    emb = emb_ref[...]                                        # (TBS, E) bf16

    # Offset j = 0: full-row dot initializes the f32 accumulator.
    acc_ref[...] = jnp.dot(emb, wconv_ref[0:E, :],
                           preferred_element_type=jnp.float32)

    # Remaining window offsets: acc[p] += emb[p + j] @ W_j.  We compute the
    # full (TBS, 3C) partial product and slide it up by j rows; positions
    # that would need rows past the tile are exactly the masked-invalid ones.
    for j in range(1, kmax):
        y = jnp.dot(emb, wconv_ref[j * E:(j + 1) * E, :],
                    preferred_element_type=jnp.float32)       # (TBS, 3C) f32
        acc_ref[0:TBS - j, :] = acc_ref[0:TBS - j, :] + y[j:, :]

    # f32 epilogue: bias + ReLU.
    act = jnp.maximum(acc_ref[...] + bconv_ref[...], 0.0)     # (TBS, 3C)

    # In-kernel validity mask (replaces the old (B*S, 3C) f32 HBM input):
    # sequence position p is valid for a channel iff p < lvalid[channel];
    # invalid (incl. cross-row-contaminated) positions are dropped with -inf.
    pos = jax.lax.broadcasted_iota(jnp.int32, (S, C3), 0)     # (S, 3C)
    valid = pos < lvalid_ref[...]                             # (S, 3C) bool
    act3 = jnp.where(valid[None], act.reshape(TB, S, C3), -jnp.inf)

    # Max-pool over the sequence axis, per batch row.
    pooled = jnp.max(act3, axis=1)                            # (TB, 3C)

    # TODO(synk): nn.Dropout(0.5) is applied as identity (eval mode); the
    # training-mode stochastic mask is not implemented in this kernel.

    # fc + bias; output columns are padded to 128 so the store is lane-dense.
    out_ref[...] = jnp.dot(pooled, wfc_ref[...],
                           preferred_element_type=jnp.float32) + bfc_ref[...]


def textcnn_forward(emb, conv_ws, conv_bs, fc_w, fc_b, kernel_sizes,
                    num_channels, num_classes, *, tile_batch=None):
    """emb: (B, S, E) f32; conv_ws[i]: (C, 1, k_i, E); fc_w: (NC, 3C)."""
    B, S, E = emb.shape
    kmax = max(kernel_sizes)
    assert S >= kmax, "sequence length must cover the largest conv kernel"
    n_branch = len(kernel_sizes)
    C3 = num_channels * n_branch
    NCP = 128                                   # lane-dense padded logit width
    assert num_classes <= NCP

    # ---- batch tiling (grid over batch rows) -------------------------------
    # Aim for >=512 im2col rows per grid step (v6e/v5e mem-bound sweet spot);
    # shrink ~2x for v7x's 64 MiB VMEM if tiles ever get large.  S should be
    # a multiple of 8 so the (TB*S,3C)->(TB,S,3C) reshape is a pure retiling.
    if tile_batch is None:
        tile_batch = max(1, 512 // S)
    if tile_batch >= B:
        tb = B                                  # single full-array block
    else:
        tb = max(8, (tile_batch // 8) * 8)      # keep (8,128) block alignment
    num_tiles = -(-B // tb)
    b_pad = num_tiles * tb

    # ---- operand packing (DMA-minimal) --------------------------------------
    # Embeddings in bf16 (halves the dominant HBM stream); zero-pad batch rows
    # so a partial last tile never feeds garbage into the matmul.
    emb_flat = emb.reshape(B * S, E).astype(jnp.bfloat16)
    if b_pad != B:
        emb_flat = jnp.pad(emb_flat, ((0, (b_pad - B) * S), (0, 0)))

    # Merge branches into one (kmax*E, 3C) weight; shorter kernels get zero
    # rows (their out-of-window contribution is exactly 0, pre-bias).
    cols = []
    for k, w in zip(kernel_sizes, conv_ws):
        w2 = jnp.transpose(w[:, 0].reshape(num_channels, k * E))     # (k*E, C)
        cols.append(jnp.pad(w2, ((0, (kmax - k) * E), (0, 0))))      # (kmax*E, C)
    w_conv = jnp.concatenate(cols, axis=1).astype(jnp.bfloat16)      # (kmax*E, 3C)
    b_conv = jnp.concatenate(conv_bs).reshape(1, C3).astype(jnp.float32)

    # Per-channel count of valid window positions (tiny; replaces the big mask).
    lvalid = jnp.repeat(
        jnp.asarray([S - k + 1 for k in kernel_sizes], dtype=jnp.int32),
        num_channels).reshape(1, C3)

    # fc packed lane-dense: pad num_classes -> 128 output lanes with zeros.
    w_fc = jnp.zeros((C3, NCP), jnp.float32).at[:, :num_classes].set(
        jnp.transpose(fc_w).astype(jnp.float32))
    b_fc = jnp.zeros((1, NCP), jnp.float32).at[:, :num_classes].set(
        fc_b.astype(jnp.float32))

    kernel = functools.partial(_textcnn_kernel, S)

    def _full(arr):          # resident operand: same (0,0) block every step
        return pl.BlockSpec(arr.shape, lambda i: (0, 0))

    out = pl.pallas_call(
        kernel,
        out_shape=jax.ShapeDtypeStruct((b_pad, NCP), jnp.float32),
        grid=(num_tiles,),
        in_specs=[
            # Streamed embedding tile.  If a profile shows exposed DMA, add
            # pipeline_mode=pl.Buffered(3) here (check v7x VMEM budget first).
            pl.BlockSpec((tb * S, E), lambda i: (i, 0)),
            _full(w_conv), _full(b_conv), _full(lvalid),
            _full(w_fc), _full(b_fc),
        ],
        out_specs=pl.BlockSpec((tb, NCP), lambda i: (i, 0)),
        scratch_shapes=[pltpu.VMEM((tb * S, C3), jnp.float32)],
        compiler_params=pltpu.CompilerParams(
            dimension_semantics=("parallel",),      # batch axis: both v7x TCs
            vmem_limit_bytes=32 * 1024 * 1024),     # raise for >=512-row tiles
    )(emb_flat, w_conv, b_conv, lvalid, w_fc, b_fc)

    return out[:B, :num_classes]


def textcnn_reference(emb, conv_ws, conv_bs, fc_w, fc_b, kernel_sizes):
    """Pure-JAX mirror of the PyTorch forward (eval mode)."""
    B, S, E = emb.shape
    pooled_list = []
    for k, w, b in zip(kernel_sizes, conv_ws, conv_bs):
        L = S - k + 1
        windows = jnp.stack([emb[:, j:j + L, :] for j in range(k)], axis=2)
        conv = jnp.einsum('blje,cje->blc', windows, w[:, 0]) + b      # (B, L, C)
        conv = jax.nn.relu(conv)
        pooled_list.append(conv.max(axis=1))                          # (B, C)
    cat = jnp.concatenate(pooled_list, axis=1)
    return cat @ fc_w.T + fc_b


if __name__ == "__main__":
    # Module config (small, forward-consistent shapes).
    vocab_size = 50
    embed_dim = 32
    num_classes = 5
    num_channels = 4
    kernel_sizes = (3, 4, 5)
    B, S = 2, 8

    key = jax.random.PRNGKey(0)
    keys = jax.random.split(key, 6 + 2 * len(kernel_sizes))
    ki = iter(keys)

    # Deterministic synthetic parameters (PyTorch layouts), float32.
    emb_table = jax.random.normal(next(ki), (vocab_size, embed_dim),
                                  dtype=jnp.float32)
    conv_ws, conv_bs = [], []
    for k in kernel_sizes:
        conv_ws.append(0.1 * jax.random.normal(
            next(ki), (num_channels, 1, k, embed_dim), dtype=jnp.float32))
        conv_bs.append(0.1 * jax.random.normal(
            next(ki), (num_channels,), dtype=jnp.float32))
    fc_w = 0.1 * jax.random.normal(
        next(ki), (num_classes, num_channels * len(kernel_sizes)),
        dtype=jnp.float32)
    fc_b = 0.1 * jax.random.normal(next(ki), (num_classes,), dtype=jnp.float32)

    # Input token ids, x: (B, S) int32; embedding gather is plain-JAX glue.
    ids = jax.random.randint(next(ki), (B, S), 0, vocab_size, dtype=jnp.int32)
    emb = emb_table[ids]                                            # (B, S, E)

    # The conv path runs bf16 on the MXU; quantize once here and feed the SAME
    # values to both the kernel and the f32 reference (tight comparison).
    emb_q = emb.astype(jnp.bfloat16).astype(jnp.float32)
    conv_ws_q = [w.astype(jnp.bfloat16).astype(jnp.float32) for w in conv_ws]

    out = jax.block_until_ready(textcnn_forward(
        emb_q, conv_ws_q, conv_bs, fc_w, fc_b,
        kernel_sizes, num_channels, num_classes))
    ref = jax.block_until_ready(textcnn_reference(
        emb_q, conv_ws_q, conv_bs, fc_w, fc_b, kernel_sizes))
    assert out.shape == (B, num_classes)
    assert jnp.allclose(out, ref, rtol=1e-3, atol=1e-3)

    # Second small run exercising the multi-step batch grid + partial-tile pad.
    B2 = 10
    ids2 = jax.random.randint(next(ki), (B2, S), 0, vocab_size, dtype=jnp.int32)
    emb2 = emb_table[ids2].astype(jnp.bfloat16).astype(jnp.float32)
    out2 = jax.block_until_ready(textcnn_forward(
        emb2, conv_ws_q, conv_bs, fc_w, fc_b,
        kernel_sizes, num_channels, num_classes, tile_batch=8))
    ref2 = jax.block_until_ready(textcnn_reference(
        emb2, conv_ws_q, conv_bs, fc_w, fc_b, kernel_sizes))
    assert out2.shape == (B2, num_classes)
    assert jnp.allclose(out2, ref2, rtol=1e-3, atol=1e-3)

    print("KERNEL_OK")
</pallas_src>

<mosaic_0001>
module attributes {stable_mosaic.version = 11 : i64} {
  func.func @_textcnn_kernel(%arg0: i32, %arg1: memref<16x32xbf16, #tpu.memory_space<vmem>>, %arg2: memref<160x12xbf16, #tpu.memory_space<vmem>>, %arg3: memref<1x12xf32, #tpu.memory_space<vmem>>, %arg4: memref<1x12xi32, #tpu.memory_space<vmem>>, %arg5: memref<12x128xf32, #tpu.memory_space<vmem>>, %arg6: memref<1x128xf32, #tpu.memory_space<vmem>>, %arg7: memref<2x128xf32, #tpu.memory_space<vmem>>, %arg8: memref<16x12xf32, #tpu.memory_space<vmem>>) attributes {dimension_semantics = [#tpu.dimension_semantics<parallel>], iteration_bounds = array<i64: 1>, scalar_prefetch = 0 : i64, scratch_operands = 1 : i64, tpu.core_type = #tpu.core_type<tc>, window_params = [{transform_indices = @transform_0, window_bounds = array<i64: 16, 32>}, {pipeline_mode = #tpu.pipeline_mode<synchronous>, transform_indices = @transform_1, window_bounds = array<i64: 160, 12>}, {pipeline_mode = #tpu.pipeline_mode<synchronous>, transform_indices = @transform_2, window_bounds = array<i64: 1, 12>}, {pipeline_mode = #tpu.pipeline_mode<synchronous>, transform_indices = @transform_3, window_bounds = array<i64: 1, 12>}, {pipeline_mode = #tpu.pipeline_mode<synchronous>, transform_indices = @transform_4, window_bounds = array<i64: 12, 128>}, {pipeline_mode = #tpu.pipeline_mode<synchronous>, transform_indices = @transform_5, window_bounds = array<i64: 1, 128>}, {transform_indices = @transform_6, window_bounds = array<i64: 2, 128>}]} {
    %c0 = arith.constant 0 : index
    %c0_0 = arith.constant 0 : index
    %0 = vector.load %arg1[%c0, %c0_0] : memref<16x32xbf16, #tpu.memory_space<vmem>>, vector<16x32xbf16>
    %c0_1 = arith.constant 0 : index
    %c0_2 = arith.constant 0 : index
    %1 = vector.load %arg2[%c0_1, %c0_2] : memref<160x12xbf16, #tpu.memory_space<vmem>>, vector<32x12xbf16>
    %cst = arith.constant dense<0.000000e+00> : vector<16x12xf32>
    %2 = tpu.matmul %0, %1, %cst {dimension_numbers = #tpu.dot_dimension_numbers<[1], [0], [0], [1], [0, 0, 1, 1], [], []>} : vector<16x32xbf16>, vector<32x12xbf16>, vector<16x12xf32> -> vector<16x12xf32>
    %c0_3 = arith.constant 0 : index
    %c0_4 = arith.constant 0 : index
    %3 = vector.load %arg8[%c0_3, %c0_4] : memref<16x12xf32, #tpu.memory_space<vmem>>, vector<16x12xf32>
    tpu.vector_store %arg8[%c0_3, %c0_4], %2 {strides = array<i32>} : memref<16x12xf32, #tpu.memory_space<vmem>>, vector<16x12xf32>,
    %c32 = arith.constant 32 : index
    %c0_5 = arith.constant 0 : index
    %4 = vector.load %arg2[%c32, %c0_5] : memref<160x12xbf16, #tpu.memory_space<vmem>>, vector<32x12xbf16>
    %cst_6 = arith.constant dense<0.000000e+00> : vector<16x12xf32>
    %5 = tpu.matmul %0, %4, %cst_6 {dimension_numbers = #tpu.dot_dimension_numbers<[1], [0], [0], [1], [0, 0, 1, 1], [], []>} : vector<16x32xbf16>, vector<32x12xbf16>, vector<16x12xf32> -> vector<16x12xf32>
    %c0_7 = arith.constant 0 : index
    %c0_8 = arith.constant 0 : index
    %6 = vector.load %arg8[%c0_7, %c0_8] : memref<16x12xf32, #tpu.memory_space<vmem>>, vector<15x12xf32>
    %7 = vector.extract_strided_slice %5 {offsets = [1, 0], sizes = [15, 12], strides = [1, 1]} : vector<16x12xf32> to vector<15x12xf32>
    %8 = arith.addf %6, %7 : vector<15x12xf32>
    %c0_9 = arith.constant 0 : index
    %c0_10 = arith.constant 0 : index
    %9 = vector.load %arg8[%c0_9, %c0_10] : memref<16x12xf32, #tpu.memory_space<vmem>>, vector<15x12xf32>
    tpu.vector_store %arg8[%c0_9, %c0_10], %8 {strides = array<i32>} : memref<16x12xf32, #tpu.memory_space<vmem>>, vector<15x12xf32>,
    %c64 = arith.constant 64 : index
    %c0_11 = arith.constant 0 : index
    %10 = vector.load %arg2[%c64, %c0_11] : memref<160x12xbf16, #tpu.memory_space<vmem>>, vector<32x12xbf16>
    %cst_12 = arith.constant dense<0.000000e+00> : vector<16x12xf32>
    %11 = tpu.matmul %0, %10, %cst_12 {dimension_numbers = #tpu.dot_dimension_numbers<[1], [0], [0], [1], [0, 0, 1, 1], [], []>} : vector<16x32xbf16>, vector<32x12xbf16>, vector<16x12xf32> -> vector<16x12xf32>
    %c0_13 = arith.constant 0 : index
    %c0_14 = arith.constant 0 : index
    %12 = vector.load %arg8[%c0_13, %c0_14] : memref<16x12xf32, #tpu.memory_space<vmem>>, vector<14x12xf32>
    %13 = vector.extract_strided_slice %11 {offsets = [2, 0], sizes = [14, 12], strides = [1, 1]} : vector<16x12xf32> to vector<14x12xf32>
    %14 = arith.addf %12, %13 : vector<14x12xf32>
    %c0_15 = arith.constant 0 : index
    %c0_16 = arith.constant 0 : index
    %15 = vector.load %arg8[%c0_15, %c0_16] : memref<16x12xf32, #tpu.memory_space<vmem>>, vector<14x12xf32>
    tpu.vector_store %arg8[%c0_15, %c0_16], %14 {strides = array<i32>} : memref<16x12xf32, #tpu.memory_space<vmem>>, vector<14x12xf32>,
    %c96 = arith.constant 96 : index
    %c0_17 = arith.constant 0 : index
    %16 = vector.load %arg2[%c96, %c0_17] : memref<160x12xbf16, #tpu.memory_space<vmem>>, vector<32x12xbf16>
    %cst_18 = arith.constant dense<0.000000e+00> : vector<16x12xf32>
    %17 = tpu.matmul %0, %16, %cst_18 {dimension_numbers = #tpu.dot_dimension_numbers<[1], [0], [0], [1], [0, 0, 1, 1], [], []>} : vector<16x32xbf16>, vector<32x12xbf16>, vector<16x12xf32> -> vector<16x12xf32>
    %c0_19 = arith.constant 0 : index
    %c0_20 = arith.constant 0 : index
    %18 = vector.load %arg8[%c0_19, %c0_20] : memref<16x12xf32, #tpu.memory_space<vmem>>, vector<13x12xf32>
    %19 = vector.extract_strided_slice %17 {offsets = [3, 0], sizes = [13, 12], strides = [1, 1]} : vector<16x12xf32> to vector<13x12xf32>
    %20 = arith.addf %18, %19 : vector<13x12xf32>
    %c0_21 = arith.constant 0 : index
    %c0_22 = arith.constant 0 : index
    %21 = vector.load %arg8[%c0_21, %c0_22] : memref<16x12xf32, #tpu.memory_space<vmem>>, vector<13x12xf32>
    tpu.vector_store %arg8[%c0_21, %c0_22], %20 {strides = array<i32>} : memref<16x12xf32, #tpu.memory_space<vmem>>, vector<13x12xf32>,
    %c128 = arith.constant 128 : index
    %c0_23 = arith.constant 0 : index
    %22 = vector.load %arg2[%c128, %c0_23] : memref<160x12xbf16, #tpu.memory_space<vmem>>, vector<32x12xbf16>
    %cst_24 = arith.constant dense<0.000000e+00> : vector<16x12xf32>
    %23 = tpu.matmul %0, %22, %cst_24 {dimension_numbers = #tpu.dot_dimension_numbers<[1], [0], [0], [1], [0, 0, 1, 1], [], []>} : vector<16x32xbf16>, vector<32x12xbf16>, vector<16x12xf32> -> vector<16x12xf32>
    %c0_25 = arith.constant 0 : index
    %c0_26 = arith.constant 0 : index
    %24 = vector.load %arg8[%c0_25, %c0_26] : memref<16x12xf32, #tpu.memory_space<vmem>>, vector<12x12xf32>
    %25 = vector.extract_strided_slice %23 {offsets = [4, 0], sizes = [12, 12], strides = [1, 1]} : vector<16x12xf32> to vector<12x12xf32>
    %26 = arith.addf %24, %25 : vector<12x12xf32>
    %c0_27 = arith.constant 0 : index
    %c0_28 = arith.constant 0 : index
    %27 = vector.load %arg8[%c0_27, %c0_28] : memref<16x12xf32, #tpu.memory_space<vmem>>, vector<12x12xf32>
    tpu.vector_store %arg8[%c0_27, %c0_28], %26 {strides = array<i32>} : memref<16x12xf32, #tpu.memory_space<vmem>>, vector<12x12xf32>,
    %c0_29 = arith.constant 0 : index
    %c0_30 = arith.constant 0 : index
    %28 = vector.load %arg8[%c0_29, %c0_30] : memref<16x12xf32, #tpu.memory_space<vmem>>, vector<16x12xf32>
    %c0_31 = arith.constant 0 : index
    %c0_32 = arith.constant 0 : index
    %29 = vector.load %arg3[%c0_31, %c0_32] : memref<1x12xf32, #tpu.memory_space<vmem>>, vector<1x12xf32>
    %30 = vector.broadcast %29 : vector<1x12xf32> to vector<16x12xf32>
    %31 = arith.addf %28, %30 : vector<16x12xf32>
    %cst_33 = arith.constant 0.000000e+00 : f32
    %32 = vector.broadcast %cst_33 : f32 to vector<16x12xf32>
    %33 = arith.maximumf %31, %32 : vector<16x12xf32>
    %34 = tpu.iota {dimensions = array<i32: 0>} : vector<8x12xi32>
    %c0_34 = arith.constant 0 : index
    %c0_35 = arith.constant 0 : index
    %35 = vector.load %arg4[%c0_34, %c0_35] : memref<1x12xi32, #tpu.memory_space<vmem>>, vector<1x12xi32>
    %36 = vector.broadcast %35 : vector<1x12xi32> to vector<8x12xi32>
    %37 = arith.cmpi slt, %34, %36 : vector<8x12xi32>
    %38 = vector.shape_cast %37 : vector<8x12xi1> to vector<1x8x12xi1>
    %39 = vector.shape_cast %33 : vector<16x12xf32> to vector<2x8x12xf32>
    %cst_36 = arith.constant 0xFF800000 : f32
    %40 = vector.shape_cast %38 : vector<1x8x12xi1> to vector<1x8x12xi1>
    %41 = vector.broadcast %40 : vector<1x8x12xi1> to vector<2x8x12xi1>
    %42 = vector.broadcast %cst_36 : f32 to vector<2x8x12xf32>
    %43 = arith.select %41, %39, %42 : vector<2x8x12xi1>, vector<2x8x12xf32>
    %cst_37 = arith.constant dense<0xFF800000> : vector<2x12xf32>
    %44 = vector.multi_reduction <maximumf>, %43, %cst_37 [1] : vector<2x8x12xf32> to vector<2x12xf32>
    %c0_38 = arith.constant 0 : index
    %c0_39 = arith.constant 0 : index
    %45 = vector.load %arg5[%c0_38, %c0_39] : memref<12x128xf32, #tpu.memory_space<vmem>>, vector<12x128xf32>
    %cst_40 = arith.constant dense<0.000000e+00> : vector<2x128xf32>
    %46 = tpu.matmul %44, %45, %cst_40 {dimension_numbers = #tpu.dot_dimension_numbers<[1], [0], [0], [1], [0, 0, 1, 1], [], []>} : vector<2x12xf32>, vector<12x128xf32>, vector<2x128xf32> -> vector<2x128xf32>
    %c0_41 = arith.constant 0 : index
    %c0_42 = arith.constant 0 : index
    %47 = vector.load %arg6[%c0_41, %c0_42] : memref<1x128xf32, #tpu.memory_space<vmem>>, vector<1x128xf32>
    %48 = vector.broadcast %47 : vector<1x128xf32> to vector<2x128xf32>
    %49 = arith.addf %46, %48 : vector<2x128xf32>
    %c0_43 = arith.constant 0 : index
    %c0_44 = arith.constant 0 : index
    %50 = vector.load %arg7[%c0_43, %c0_44] : memref<2x128xf32, #tpu.memory_space<vmem>>, vector<2x128xf32>
    tpu.vector_store %arg7[%c0_43, %c0_44], %49 {strides = array<i32>} : memref<2x128xf32, #tpu.memory_space<vmem>>, vector<2x128xf32>,
    return
  }
  func.func @transform_0(%arg0: i32) -> (i32, i32) {
    %c0_i32 = arith.constant 0 : i32
    %c0_i32_0 = arith.constant 0 : i32
    return %arg0, %c0_i32 : i32, i32
  }
  func.func @transform_1(%arg0: i32) -> (i32, i32) {
    %c0_i32 = arith.constant 0 : i32
    %c0_i32_0 = arith.constant 0 : i32
    %c0_i32_1 = arith.constant 0 : i32
    return %c0_i32, %c0_i32_0 : i32, i32
  }
  func.func @transform_2(%arg0: i32) -> (i32, i32) {
    %c0_i32 = arith.constant 0 : i32
    %c0_i32_0 = arith.constant 0 : i32
    %c0_i32_1 = arith.constant 0 : i32
    return %c0_i32, %c0_i32_0 : i32, i32
  }
  func.func @transform_3(%arg0: i32) -> (i32, i32) {
    %c0_i32 = arith.constant 0 : i32
    %c0_i32_0 = arith.constant 0 : i32
    %c0_i32_1 = arith.constant 0 : i32
    return %c0_i32, %c0_i32_0 : i32, i32
  }
  func.func @transform_4(%arg0: i32) -> (i32, i32) {
    %c0_i32 = arith.constant 0 : i32
    %c0_i32_0 = arith.constant 0 : i32
    %c0_i32_1 = arith.constant 0 : i32
    return %c0_i32, %c0_i32_0 : i32, i32
  }
  func.func @transform_5(%arg0: i32) -> (i32, i32) {
    %c0_i32 = arith.constant 0 : i32
    %c0_i32_0 = arith.constant 0 : i32
    %c0_i32_1 = arith.constant 0 : i32
    return %c0_i32, %c0_i32_0 : i32, i32
  }
  func.func @transform_6(%arg0: i32) -> (i32, i32) {
    %c0_i32 = arith.constant 0 : i32
    %c0_i32_0 = arith.constant 0 : i32
    return %arg0, %c0_i32 : i32, i32
  }
}

</mosaic_0001>

<bundles_post_ra>
// kernel: tpu_custom_call.1
= control target key start
LH: loop header
LB: loop body
LE: loop exit
PB: predicated region body
PF: predicated region fallthrough
CT: control target
= control target key end

     0   :  { %v656_v1 = vmov 0.0   ;;  %vm657_vm0 = vmmov 0   ;;  %vm48_vm1 = vcmask 261120   ;;  %s778_s0 = inlined_call_operand.vmem [shape: bf16[16,32], index: 0, kind: input, shape index: {}]   ;;  %s779_s1 = inlined_call_operand.vmem [shape: bf16[160,12], index: 1, kind: input, shape index: {}]   ;;  %s780_s2 = inlined_call_operand.vmem [shape: f32[1,12], index: 2, kind: input, shape index: {}]   ;;  %s781_s3 = inlined_call_operand.vmem [shape: s32[1,12], index: 3, kind: input, shape index: {}]   ;;  %s782_s4 = inlined_call_operand.vmem [shape: f32[12,128], index: 4, kind: input, shape index: {}]   ;;  %s783_s5 = inlined_call_operand.vmem [shape: f32[1,128], index: 5, kind: input, shape index: {}]   ;;  %s784_s6 = inlined_call_operand.hbm [shape: f32[2,128], index: 6, kind: output, shape index: {}]  }
   0x1   :  { %v621_v0 = vld [vmem:[%s779_s1] sm:$0xff]   ;;  %565 = vmatprep.subr.bf16.mxu0 %v656_v1  ;;  %573 = vmatprep.subr.bf16.mxu1 %v656_v1  ;;  %v622_v2 = vld [vmem:[%s779_s1 + $0x10] sm:$0xff]   ;;  %v623_v3 = vld [vmem:[%s779_s1 + $0x8] sm:$0xff]  }
   0x2   :  { %566 = vmatpush3.bf16.msra.mxu0 %v621_v0  ;;  %569 = vmatprep.mubr.msk.bf16.mxu0 %vm657_vm0, %v656_v1  ;;  %v624_v4 = vld [vmem:[%s779_s1 + $0x18] sm:$0xff]   ;;  %v625_v5 = vld [vmem:[%s778_s0] sm:$0xff]   ;;  %v628_v7 = vld [vmem:[%s779_s1 + $0x30] sm:$0xff]  }
   0x3   :  { %574 = vmatpush3.bf16.msra.mxu1 %v622_v2  ;;  %567 = vmatprep.subr.bf16.mxu0 %v656_v1  ;;  %v626_v6 = vld [vmem:[%s779_s1 + $0x20] sm:$0xff]   ;;  %v627_v8 = vld [vmem:[%s779_s1 + $0x28] sm:$0xff]  }
   0x4   :  { %575 = vmatprep.subr.bf16.mxu1 %v656_v1  ;;  %577 = vmatprep.mubr.msk.bf16.mxu1 %vm657_vm0, %v656_v1 }
   0x6   :  { %568 = vmatpush3.bf16.msra.mxu0 %v623_v3 }
   0x7   :  { %576 = vmatpush3.bf16.msra.mxu1 %v624_v4  ;;  %581 = vmatprep.subr.bf16.mxu0 %v656_v1 }
   0x8   :  { %589 = vmatprep.subr.bf16.mxu1 %v656_v1 }
   0x9   :  { %570 = vmatmul.mubr.msk.bf16.vlgmr.msra.gmra.mrb[0].mxu0 %vm48_vm1, %v625_v5 }
   0xa   :  { %578 = vmatmul.mubr.msk.bf16.vlgmr.msra.gmra.mrb[0].mxu1 %vm48_vm1, %v625_v5  ;;  %582 = vmatpush3.bf16.msra.mxu0 %v626_v6 }
   0xb   :  { %583 = vmatprep.subr.bf16.mxu0 %v656_v1  ;;  %585 = vmatprep.mubr.msk.bf16.mxu0 %vm657_vm0, %v656_v1 }
   0xc   :  { %11 = vsyncpa [#allocation4], 0  ;;  %590 = vmatpush3.bf16.msra.mxu1 %v628_v7  ;;  %v629_v9 = vld [vmem:[%s779_s1 + $0x38] sm:$0xff]   ;;  %593 = vmatprep.mubr.msk.bf16.mxu1 %vm657_vm0, %v656_v1  ;;  %v630_v10 = vld [vmem:[%s779_s1 + $0x40] sm:$0xff]   ;;  %vm373_vm2 = vcmask 1043456   ;;  %v658_v14 = vmov 0.0|0.0   ;;  %v397_v0 = vlaneseq }
   0xd   :  { %591 = vmatprep.subr.bf16.mxu1 %v656_v1  ;;  %v631_v11 = vld [vmem:[%s779_s1 + $0x48] sm:$0xff]   ;;  %v423_v12 = vld [vmem:[%s782_s4] sm:$0xff]  ;;  %vm659_vm3 = vmmov 1   ;;  %vm93_vm5 = vcmask 97280   ;;  %vm157_vm6 = vcmask 1046528   ;;  %vm166_vm7 = vcmask 96256  }
   0xe   :  { %584 = vmatpush3.bf16.msra.mxu0 %v627_v8  ;;  %v424_v13 = vld [vmem:[%s782_s4 + $0x8] sm:$0xf]  ;;  %vm614_vm4 = vmpackc.low %vm373_vm2, %vm659_vm3  ;;  %vm229_vm8 = vcmask 1045504   ;;  %vm301_vm9 = vcmask 1044480   ;;  %vm238_vm10 = vcmask 95232   ;;  %vm310_vm11 = vcmask 94208  }
   0xf   :  { %597 = vmatprep.subr.bf16.mxu0 %v656_v1  ;;  %v613_v15 = vpack.c.bf16 %v424_v13, %v423_v12  ;;  %vm382_vm12 = vcmask 93184   ;;  %v398_v2 = vshrl.u32 %v397_v0, 7  ;;  %v543_v3 = vld [vmem:[%s781_s3] ss:$0 sm:$0xff]  ;;  %vm434_vm14 = vcmask 1041409   ;;  %s660_s24 = smov [#allocation3]  }
  0x10   :  { %592 = vmatpush3.bf16.msra.mxu1 %v629_v9  ;;  %s518_s25 = sshll.u32 %s660_s24, 4  ;;  %s519_s25 = int_to_ptr.vmem [resolvable:$true] %s518_s25 }
  0x11   :  { %586 = vmatmul.mubr.msk.bf16.vlgmr.msra.gmra.mrb[4].mxu0 %vm48_vm1, %v625_v5  ;;  %612 = vmatprep.subr.bf16.mxu1 %v658_v14  ;;  %vm404_vm13 = vcmp.lt.s32.totalorder %v398_v2, %v543_v3  ;;  %s632_s26 = scalar_lea.vmem %s519_s25, 32  ;;  %p637_p1 = scmp.lt.s32.totalorder %s519_s25, %s519_s25 }
  0x12   :  { %598 = vmatpush3.bf16.msra.mxu0 %v630_v10  ;;  %601 = vmatprep.mubr.msk.bf16.mxu0 %vm657_vm0, %v656_v1  ;;  %p633_p0 = scmp.ne.s32.totalorder %s519_s25, %s632_s26  ;;  %p638_p2 = scmp.lt.s32.totalorder %s632_s26, %s632_s26 }
  0x13   :  { %594 = vmatmul.mubr.msk.bf16.vlgmr.msra.gmra.mrb[4].mxu1 %vm48_vm1, %v625_v5  ;;  %599 = vmatprep.subr.bf16.mxu0 %v656_v1 }
  0x14   :  { %609 = vmatprep.mubr.msk.f32.mxu1 %vm657_vm0, %v656_v1  ;;  %615 = vmatpush3.bf16.msk.msra.mxu1 %vm614_vm4, %v613_v15  ;;  %v542_v1 = vld [vmem:[%s780_s2] ss:$0 sm:$0xff]  ;;  %p639_p3 = por %p638_p2, %p637_p1 }
  0x16   :  { %600 = vmatpush3.bf16.msra.mxu0 %v631_v11  ;;  %p640_p4 = pnand %p639_p3, %p633_p0 }
  0x19   :  { %602 = vmatmul.mubr.msk.bf16.vlgmr.msra.gmra.mrb[8].mxu0 %vm48_vm1, %v625_v5 }
  0xdc   :  { %v86_v16 = vpop.f32.mrb[0].mxu0 }
  0xdd   :  { %94 = vst.msk [vmem:[#allocation2] sm:$0xff] %vm93_vm5, %v86_v16  ;;  %v571_v17 = vpop.f32.mrb[1].mxu0  ;;  %v146_v18 = vpop.f32.mrb[0].mxu1 }
  0xde   :  { %v89_v19 = vpop.f32.mrb[2].mxu0  ;;  %v158_v20 = vrot.slane %v146_v18, 1  ;;  %v579_v21 = vpop.f32.mrb[1].mxu1 }
  0xdf   :  { %95 = vst.msk [vmem:[#allocation2 + $0x8] sm:$0xff] %vm93_vm5, %v89_v19  ;;  %v572_v22 = vpop.f32.mrb[3].mxu0  ;;  %v149_v23 = vpop.f32.mrb[2].mxu1 }
  0xe0   :  { %v159_v24 = vrot.slane %v149_v23, 1  ;;  %v580_v25 = vpop.f32.mrb[3].mxu1 }
  0xe2   :  { %v160_v26 = vsel %vm157_vm6, %v158_v20, %v159_v24 }
  0xe4   :  { %v153_v27 = vld [vmem:[#allocation2] sm:$0xff]  ;;  %v218_v28 = vpop.f32.mrb[4].mxu0 }
  0xe5   :  { %v163_v29 = vadd.f32 %v160_v26, %v153_v27  ;;  %v230_v30 = vrot.slane %v218_v28, 2  ;;  %v587_v31 = vpop.f32.mrb[5].mxu0  ;;  %v544_v27 = vld [vmem:[%s783_s5] ss:$0 sm:$0xff] }
  0xe6   :  { %v154_v32 = vld [vmem:[#allocation2 + $0x8] sm:$0x7f]  ;;  %v221_v33 = vpop.f32.mrb[6].mxu0  ;;  %v290_v34 = vpop.f32.mrb[4].mxu1 }
  0xe7   :  { %v164_v35 = vadd.f32 %v159_v24, %v154_v32  ;;  %165 = vst.msk [vmem:[#allocation2] sm:$0xff] %vm93_vm5, %v163_v29  ;;  %v231_v36 = vrot.slane %v221_v33, 2  ;;  %v588_v37 = vpop.f32.mrb[7].mxu0  ;;  %v302_v38 = vrot.slane %v290_v34, 3  ;;  %v595_v39 = vpop.f32.mrb[5].mxu1 }
  0xe8   :  { %v293_v40 = vpop.f32.mrb[6].mxu1 }
  0xe9   :  { %167 = vst.msk [vmem:[#allocation2 + $0x8] sm:$0x7f] %vm166_vm7, %v164_v35  ;;  %v232_v41 = vsel %vm229_vm8, %v230_v30, %v231_v36  ;;  %v303_v42 = vrot.slane %v293_v40, 3  ;;  %v596_v43 = vpop.f32.mrb[7].mxu1 }
  0xeb   :  { %v304_v44 = vsel %vm301_vm9, %v302_v38, %v303_v42 }
  0xec   :  { %v362_v45 = vpop.f32.mrb[8].mxu0 }
  0xed   :  { %v374_v46 = vrot.slane %v362_v45, 4  ;;  %v603_v47 = vpop.f32.mrb[9].mxu0 }
  0xee   :  { %v225_v48 = vld [vmem:[#allocation2] sm:$0xff]  ;;  %v365_v49 = vpop.f32.mrb[10].mxu0 }
  0xef   :  { %v235_v50 = vadd.f32 %v232_v41, %v225_v48  ;;  %v375_v51 = vrot.slane %v365_v49, 4  ;;  %v604_v52 = vpop.f32.mrb[11].mxu0 }
  0xf0   :  { %v226_v53 = vld [vmem:[#allocation2 + $0x8] sm:$0x3f] }
  0xf1   :  { %v236_v54 = vadd.f32 %v231_v36, %v226_v53  ;;  %237 = vst.msk [vmem:[#allocation2] sm:$0xff] %vm93_vm5, %v235_v50  ;;  %v376_v55 = vsel %vm373_vm2, %v374_v46, %v375_v51 }
  0xf3   :  { %239 = vst.msk [vmem:[#allocation2 + $0x8] sm:$0x3f] %vm238_vm10, %v236_v54 }
  0xf8   :  { %v297_v56 = vld [vmem:[#allocation2] sm:$0xff] }
  0xf9   :  { %v307_v57 = vadd.f32 %v304_v44, %v297_v56 }
  0xfa   :  { %v298_v58 = vld [vmem:[#allocation2 + $0x8] sm:$0x1f] }
  0xfb   :  { %v308_v59 = vadd.f32 %v303_v42, %v298_v58  ;;  %309 = vst.msk [vmem:[#allocation2] sm:$0xff] %vm93_vm5, %v307_v57 }
  0xfd   :  { %311 = vst.msk [vmem:[#allocation2 + $0x8] sm:$0x1f] %vm310_vm11, %v308_v59 }
 0x102   :  { %v369_v60 = vld [vmem:[#allocation2] sm:$0xff] }
 0x103   :  { %v379_v61 = vadd.f32 %v376_v55, %v369_v60 }
 0x104   :  { %v370_v62 = vld [vmem:[#allocation2 + $0x8] sm:$0xf] }
 0x105   :  { %v380_v63 = vadd.f32 %v375_v51, %v370_v62  ;;  %381 = vst.msk [vmem:[#allocation2] sm:$0xff] %vm93_vm5, %v379_v61 }
 0x107   :  { %383 = vst.msk [vmem:[#allocation2 + $0x8] sm:$0xf] %vm382_vm12, %v380_v63 }
 0x10c   :  { %v384_v4 = vld [vmem:[#allocation2] sm:$0xff] }
 0x10d   :  { %v393_v5 = vadd.f32 %v542_v1, %v384_v4 }
 0x10e   :  { %v385_v6 = vld [vmem:[#allocation2 + $0x8] sm:$0xff] }
 0x10f   :  { %v394_v7 = vadd.f32 %v542_v1, %v385_v6  ;;  %v395_v8 = vmax.f32 %v393_v5, 0.0 }
 0x111   :  { %v396_v9 = vmax.f32 %v394_v7, 0.0  ;;  %v407_v10 = vsel %vm404_vm13, %v395_v8, -inf }
 0x112   :  { %v409_v11 = vsel %vm93_vm5, %v407_v10, -inf }
 0x113   :  { %v408_v12 = vsel %vm404_vm13, %v396_v9, -inf  ;;  %v410_v13 = vrot.slane %v409_v11, 4 }
 0x114   :  { %v416_v14 = vsel %vm93_vm5, %v408_v12, -inf }
 0x115   :  { %v411_v15 = vmax.f32 %v409_v11, %v410_v13  ;;  %v417_v16 = vrot.slane %v416_v14, 4 }
 0x117   :  { %v412_v17 = vrot.slane %v411_v15, 2  ;;  %v418_v18 = vmax.f32 %v416_v14, %v417_v16 }
 0x119   :  { %v413_v19 = vmax.f32 %v411_v15, %v412_v17  ;;  %v419_v20 = vrot.slane %v418_v18, 2 }
 0x11b   :  { %v414_v21 = vrot.slane %v413_v19, 1  ;;  %v420_v22 = vmax.f32 %v418_v18, %v419_v20 }
 0x11d   :  { %v421_v23 = vrot.slane %v420_v22, 1  ;;  %v415_v24 = vmax.f32 %v413_v19, %v414_v21 }
 0x11f   :  { %v422_v25 = vmax.f32 %v420_v22, %v421_v23 }
 0x121   :  { %v435_v26 = vsel %vm434_vm14, %v422_v25, %v415_v24 }
 0x122   :  { %610 = vmatmul.mubr.msk.f32.vlgmr.msra.gmra.mrb[8].mxu1 %vm93_vm5, %v435_v26 }
 0x1f5   :  { %v507_v28 = vpop.f32.mrb[8].mxu1 }
 0x1f6   :  { %v508_v29 = vadd.f32 %v544_v27, %v507_v28  ;;  %v611_v30 = vpop.f32.mrb[9].mxu1 }
 0x1f8   :  { %511 = vst [vmem:[#allocation3] sm:$0x3] %v508_v29 }
 0x1f9   :  { %643 = shalt.err (!%p640_p4)
}
 0x1fa   :  { %s644_s29 = scalar_lea.hbm %s784_s6, 32 }
 0x1fb   :  { %p645_p5 = scmp.ne.s32.totalorder %s784_s6, %s644_s29  ;;  %p648_p6 = scmp.lt.u32.totalorder %s644_s29, %s784_s6 }
 0x1fd   :  { %p650_p7 = pnand %p648_p6, %p645_p5 }
 0x1ff   :  { %653 = shalt.err (!%p650_p7)
}
 0x200   :  { %521 = dma.vmem_to_hbm [thread:$0]  %s519_s25, 32, %s784_s6, [#allocation4]  }
 0x201   :  { %654 = dma.done.wait [#allocation4], 32  }
 0x202   :  { %655 = vsyncadd [#allocation4], 4294967264 }
 0x203   :  { %525 = vsyncpa [#allocation4], 1 }

</bundles_post_ra>
